<compile_context>
chip_gen: v6e
topology: v6e:2x2x1
jax: 0.10.0
libtpu: 0.0.40
codegen_flags: <defaults>
</compile_context>

<pallas_src>
import jax
import jax.numpy as jnp
from jax import lax
from jax.experimental import pallas as pl
from jax.experimental.pallas import tpu as pltpu

_LANE = 128      # vreg lane width
_SUBLANE = 8     # f32 sublane count


def _round_up(a, m):
    return (a + m - 1) // m * m


def _round_down(a, m):
    return max(a // m, 0) * m


def fm_kernel(x_ref, rhs_ref, s_ref, b_ref, o_ref):
    """One batch tile of the FM forward.

    x_ref  : (tile_b, n)        X batch tile (streamed), f32 or bf16
    rhs_ref: (n, r)             fused RHS = [ W^T | V | 0 pad ]   (resident)
    s_ref  : (1, n)             colsum(V*V), f32                   (resident)
    b_ref  : (1, pre_dim)       linear bias, f32                   (resident)
    o_ref  : (tile_b, pre_dim)  narrow output tile (masked vst)
    """
    pre_dim = o_ref.shape[1]
    x = x_ref[...]
    xf = x.astype(jnp.float32)          # f32 path for the out_2 VPU work

    # Single MXU pass: prod = X @ [ W^T | V | 0 ].
    prod = jnp.dot(x, rhs_ref[...], preferred_element_type=jnp.float32)

    lin = prod[:, :pre_dim]             # X @ W^T

    # out_1 = sum_f (X@V)_f^2 : mask out the linear lanes (zero-pad lanes are 0).
    col = lax.broadcasted_iota(jnp.int32, prod.shape, 1)
    sq = jnp.where(col >= pre_dim, prod * prod, 0.0)
    out_1 = jnp.sum(sq, axis=1, keepdims=True)                    # (tb, 1)

    # out_2 collapses algebraically: sum_f (X^2 @ V^2)_f == (X^2) @ colsum(V^2).
    out_2 = jnp.sum((xf * xf) * s_ref[...], axis=1, keepdims=True)  # (tb, 1)

    o_ref[...] = (lin + b_ref[...] + 0.5 * (out_1 - out_2)).astype(o_ref.dtype)


def fm_forward(x, v, w, b, *, tile_b=None, use_bf16_matmul=False,
               vmem_budget_bytes=32 * 1024 * 1024):
    """FM forward. x:(B,n)  v:(n,k)  w:(pre_dim,n)  b:(pre_dim,) -> (B, pre_dim)."""
    B, n = x.shape
    k = v.shape[1]
    pre_dim = w.shape[0]

    f32 = jnp.float32
    stream_dtype = jnp.bfloat16 if use_bf16_matmul else f32
    elem_bytes = 2 if use_bf16_matmul else 4
    sub_mult = 16 if use_bf16_matmul else _SUBLANE   # sublane packing of X tiles

    # Fused RHS = [ W^T | V | 0 pad ]; one 128-lane block when pre_dim + k <= 128.
    r = _round_up(pre_dim + k, _LANE)
    n_lanes = _round_up(n, _LANE)            # VMEM lane padding of an X row
    out_lanes = _round_up(pre_dim, _LANE)    # VMEM lane padding of an out row

    vf = v.astype(f32)
    rhs = jnp.zeros((n, r), f32)
    rhs = rhs.at[:, :pre_dim].set(w.astype(f32).T)
    rhs = rhs.at[:, pre_dim:pre_dim + k].set(vf)
    rhs = rhs.astype(stream_dtype)           # bf16 also narrows the linear term

    s_row = jnp.sum(vf * vf, axis=1).reshape(1, n)
    b_row = b.astype(f32).reshape(1, pre_dim)

    # ---- tile_b selection: VMEM-budget derived --------------------------------
    rhs_vmem = 2 * _round_up(n, 16) * r * elem_bytes            # dbl-buffered RHS
    misc_vmem = 2 * _SUBLANE * (n_lanes + out_lanes) * 4 + (1 << 20)
    per_row_vmem = (2 * n_lanes * elem_bytes      # X double buffer
                    + 2 * out_lanes * 4           # output double buffer (lane-padded)
                    + 2 * r * 4                   # prod + masked-square temporaries
                    + n_lanes * 4)                # f32 upcast of x for out_2
    avail = max(vmem_budget_bytes - rhs_vmem - misc_vmem, per_row_vmem * sub_mult)
    cap_vmem = max(sub_mult, _round_down(avail // per_row_vmem, sub_mult))

    if tile_b is None:
        # Target ~4 MiB of streamed X per buffer (step overhead ~0.35 us then
        # negligible), capped at 4096 rows to bound in-kernel f32 intermediates.
        tile_b = min((4 << 20) // max(n_lanes * elem_bytes, 1), 4096)
    tile_b = max(sub_mult, _round_down(tile_b, sub_mult))
    tile_b = min(tile_b, cap_vmem)

    b_ceil = _round_up(B, sub_mult)
    tile_b = min(tile_b, b_ceil)
    if b_ceil >= 2 * sub_mult:
        # Keep >=2 grid tiles (v7x megacore), prefer ~4 while tiles stay >=512 rows.
        half = _round_up(-(-b_ceil // 2), sub_mult)
        quarter = _round_up(-(-b_ceil // 4), sub_mult)
        tile_b = min(tile_b, quarter if quarter >= 512 else half)
    tile_b = max(tile_b, sub_mult)

    b_pad = _round_up(B, tile_b)

    # No feature-dim padding; pad only the batch tail, and only when needed.
    x_in = x.astype(stream_dtype)
    if b_pad != B:
        x_in = jnp.pad(x_in, ((0, b_pad - B), (0, 0)))

    vmem_need = tile_b * per_row_vmem + rhs_vmem + misc_vmem
    vmem_limit = min(max(int(vmem_need * 1.25), 16 << 20), 48 << 20)  # v7x-safe

    grid = (b_pad // tile_b,)
    out = pl.pallas_call(
        fm_kernel,
        out_shape=jax.ShapeDtypeStruct((b_pad, pre_dim), f32),
        grid_spec=pltpu.PrefetchScalarGridSpec(
            num_scalar_prefetch=0,
            grid=grid,
            in_specs=[
                pl.BlockSpec((tile_b, n), lambda i: (i, 0)),   # X: streamed
                pl.BlockSpec((n, r), lambda i: (0, 0)),        # fused RHS: resident
                pl.BlockSpec((1, n), lambda i: (0, 0)),        # colsum(V^2): resident
                pl.BlockSpec((1, pre_dim), lambda i: (0, 0)),  # bias: resident
            ],
            out_specs=pl.BlockSpec((tile_b, pre_dim), lambda i: (i, 0)),
        ),
        compiler_params=pltpu.CompilerParams(
            dimension_semantics=("parallel",),   # batch tiles shard across TCs
            vmem_limit_bytes=vmem_limit,
        ),
    )(x_in, rhs, s_row, b_row)

    return out[:B]


def fm_reference(x, v, w, b):
    """Pure-JAX reference mirroring the PyTorch forward."""
    xf = x.astype(jnp.float32)
    vf = v.astype(jnp.float32)
    out_1 = jnp.sum(jnp.matmul(xf, vf) ** 2, axis=1, keepdims=True)
    out_2 = jnp.sum(jnp.matmul(xf ** 2, vf ** 2), axis=1, keepdims=True)
    out_interaction = 0.5 * (out_1 - out_2)
    out_linear = jnp.matmul(xf, w.T.astype(jnp.float32)) + b.astype(jnp.float32)
    return out_linear + out_interaction


if __name__ == "__main__":
    key = jax.random.PRNGKey(0)
    kx, kv, kw, kb, kx2 = jax.random.split(key, 5)

    # Small shapes consistent with the module: n features, k factors, pre_dim=6.
    B, n, k, pre_dim = 8, 16, 8, 6
    x = jax.random.normal(kx, (B, n), dtype=jnp.float32)
    v = jax.random.normal(kv, (n, k), dtype=jnp.float32)              # Parameter(randn(n, k))
    w = jax.random.normal(kw, (pre_dim, n), dtype=jnp.float32) * 0.1  # Linear weight
    b = jax.random.normal(kb, (pre_dim,), dtype=jnp.float32) * 0.1    # Linear bias

    out = jax.block_until_ready(fm_forward(x, v, w, b))
    ref = fm_reference(x, v, w, b)
    assert out.shape == (B, pre_dim), out.shape
    assert jnp.allclose(out, ref, atol=1e-4, rtol=1e-4), (
        "max abs err = %g" % float(jnp.max(jnp.abs(out - ref))))

    # Larger / ragged batch: exercises auto tile_b, batch-tail padding, multi-step grid.
    B2 = 300
    x2 = jax.random.normal(kx2, (B2, n), dtype=jnp.float32)
    out2 = jax.block_until_ready(fm_forward(x2, v, w, b))
    ref2 = fm_reference(x2, v, w, b)
    assert out2.shape == (B2, pre_dim), out2.shape
    assert jnp.allclose(out2, ref2, atol=1e-4, rtol=1e-4), (
        "max abs err = %g" % float(jnp.max(jnp.abs(out2 - ref2))))

    # Explicit tile_b path (3-step grid, padded last tile).
    out3 = jax.block_until_ready(fm_forward(x2, v, w, b, tile_b=128))
    assert jnp.allclose(out3, ref2, atol=1e-4, rtol=1e-4), (
        "max abs err = %g" % float(jnp.max(jnp.abs(out3 - ref2))))

    print("KERNEL_OK")
</pallas_src>

<mosaic_0001>
module attributes {stable_mosaic.version = 11 : i64} {
  func.func @fm_kernel(%arg0: i32, %arg1: memref<8x16xf32, #tpu.memory_space<vmem>>, %arg2: memref<16x128xf32, #tpu.memory_space<vmem>>, %arg3: memref<1x16xf32, #tpu.memory_space<vmem>>, %arg4: memref<1x6xf32, #tpu.memory_space<vmem>>, %arg5: memref<8x6xf32, #tpu.memory_space<vmem>>) attributes {dimension_semantics = [#tpu.dimension_semantics<parallel>], iteration_bounds = array<i64: 1>, scalar_prefetch = 0 : i64, scratch_operands = 0 : i64, tpu.core_type = #tpu.core_type<tc>, window_params = [{transform_indices = @transform_0, window_bounds = array<i64: 8, 16>}, {pipeline_mode = #tpu.pipeline_mode<synchronous>, transform_indices = @transform_1, window_bounds = array<i64: 16, 128>}, {pipeline_mode = #tpu.pipeline_mode<synchronous>, transform_indices = @transform_2, window_bounds = array<i64: 1, 16>}, {pipeline_mode = #tpu.pipeline_mode<synchronous>, transform_indices = @transform_3, window_bounds = array<i64: 1, 6>}, {transform_indices = @transform_4, window_bounds = array<i64: 8, 6>}]} {
    %c0 = arith.constant 0 : index
    %c0_0 = arith.constant 0 : index
    %0 = vector.load %arg1[%c0, %c0_0] : memref<8x16xf32, #tpu.memory_space<vmem>>, vector<8x16xf32>
    %c0_1 = arith.constant 0 : index
    %c0_2 = arith.constant 0 : index
    %1 = vector.load %arg2[%c0_1, %c0_2] : memref<16x128xf32, #tpu.memory_space<vmem>>, vector<16x128xf32>
    %cst = arith.constant dense<0.000000e+00> : vector<8x128xf32>
    %2 = tpu.matmul %0, %1, %cst {dimension_numbers = #tpu.dot_dimension_numbers<[1], [0], [0], [1], [0, 0, 1, 1], [], []>} : vector<8x16xf32>, vector<16x128xf32>, vector<8x128xf32> -> vector<8x128xf32>
    %3 = vector.extract_strided_slice %2 {offsets = [0, 0], sizes = [8, 6], strides = [1, 1]} : vector<8x128xf32> to vector<8x6xf32>
    %4 = tpu.iota {dimensions = array<i32: 1>} : vector<8x128xi32>
    %c6_i32 = arith.constant 6 : i32
    %5 = vector.broadcast %c6_i32 : i32 to vector<8x128xi32>
    %6 = arith.cmpi sge, %4, %5 : vector<8x128xi32>
    %7 = arith.mulf %2, %2 : vector<8x128xf32>
    %cst_3 = arith.constant 0.000000e+00 : f32
    %8 = vector.broadcast %cst_3 : f32 to vector<8x128xf32>
    %9 = arith.select %6, %7, %8 : vector<8x128xi1>, vector<8x128xf32>
    %cst_4 = arith.constant dense<0.000000e+00> : vector<8xf32>
    %10 = vector.multi_reduction <add>, %9, %cst_4 [1] : vector<8x128xf32> to vector<8xf32>
    %11 = vector.shape_cast %10 : vector<8xf32> to vector<8x1xf32>
    %12 = arith.mulf %0, %0 : vector<8x16xf32>
    %c0_5 = arith.constant 0 : index
    %c0_6 = arith.constant 0 : index
    %13 = vector.load %arg3[%c0_5, %c0_6] : memref<1x16xf32, #tpu.memory_space<vmem>>, vector<1x16xf32>
    %14 = vector.broadcast %13 : vector<1x16xf32> to vector<8x16xf32>
    %15 = arith.mulf %12, %14 : vector<8x16xf32>
    %cst_7 = arith.constant dense<0.000000e+00> : vector<8xf32>
    %16 = vector.multi_reduction <add>, %15, %cst_7 [1] : vector<8x16xf32> to vector<8xf32>
    %17 = vector.shape_cast %16 : vector<8xf32> to vector<8x1xf32>
    %c0_8 = arith.constant 0 : index
    %c0_9 = arith.constant 0 : index
    %18 = vector.load %arg4[%c0_8, %c0_9] : memref<1x6xf32, #tpu.memory_space<vmem>>, vector<1x6xf32>
    %19 = vector.broadcast %18 : vector<1x6xf32> to vector<8x6xf32>
    %20 = arith.addf %3, %19 : vector<8x6xf32>
    %21 = arith.subf %11, %17 : vector<8x1xf32>
    %cst_10 = arith.constant 5.000000e-01 : f32
    %22 = vector.broadcast %cst_10 : f32 to vector<8x1xf32>
    %23 = arith.mulf %22, %21 : vector<8x1xf32>
    %24 = vector.broadcast %23 : vector<8x1xf32> to vector<8x6xf32>
    %25 = arith.addf %20, %24 : vector<8x6xf32>
    %c0_11 = arith.constant 0 : index
    %c0_12 = arith.constant 0 : index
    %26 = vector.load %arg5[%c0_11, %c0_12] : memref<8x6xf32, #tpu.memory_space<vmem>>, vector<8x6xf32>
    tpu.vector_store %arg5[%c0_11, %c0_12], %25 {strides = array<i32>} : memref<8x6xf32, #tpu.memory_space<vmem>>, vector<8x6xf32>,
    return
  }
  func.func @transform_0(%arg0: i32) -> (i32, i32) {
    %c0_i32 = arith.constant 0 : i32
    %c0_i32_0 = arith.constant 0 : i32
    return %arg0, %c0_i32 : i32, i32
  }
  func.func @transform_1(%arg0: i32) -> (i32, i32) {
    %c0_i32 = arith.constant 0 : i32
    %c0_i32_0 = arith.constant 0 : i32
    %c0_i32_1 = arith.constant 0 : i32
    return %c0_i32, %c0_i32_0 : i32, i32
  }
  func.func @transform_2(%arg0: i32) -> (i32, i32) {
    %c0_i32 = arith.constant 0 : i32
    %c0_i32_0 = arith.constant 0 : i32
    %c0_i32_1 = arith.constant 0 : i32
    return %c0_i32, %c0_i32_0 : i32, i32
  }
  func.func @transform_3(%arg0: i32) -> (i32, i32) {
    %c0_i32 = arith.constant 0 : i32
    %c0_i32_0 = arith.constant 0 : i32
    %c0_i32_1 = arith.constant 0 : i32
    return %c0_i32, %c0_i32_0 : i32, i32
  }
  func.func @transform_4(%arg0: i32) -> (i32, i32) {
    %c0_i32 = arith.constant 0 : i32
    %c0_i32_0 = arith.constant 0 : i32
    return %arg0, %c0_i32 : i32, i32
  }
}

</mosaic_0001>

<bundles_post_ra>
// kernel: tpu_custom_call.1
= control target key start
LH: loop header
LB: loop body
LE: loop exit
PB: predicated region body
PF: predicated region fallthrough
CT: control target
= control target key end

     0   :  { %9 = vsyncpa [#allocation3], 0  ;;  %s302_s0 = inlined_call_operand.hbm [shape: f32[8,16], index: 0, kind: input, shape index: {}]   ;;  %s303_s1 = inlined_call_operand.hbm [shape: f32[16,128], index: 1, kind: input, shape index: {}]   ;;  %s304_s2 = inlined_call_operand.vmem [shape: f32[1,16], index: 2, kind: input, shape index: {}]   ;;  %s305_s3 = inlined_call_operand.vmem [shape: f32[1,6], index: 3, kind: input, shape index: {}]   ;;  %s306_s4 = inlined_call_operand.hbm [shape: f32[8,6], index: 4, kind: output, shape index: {}]  }
   0x1   :  { %10 = vsyncpa [#allocation6], 0 }
   0x2   :  { %11 = vsyncpa [#allocation4], 0  ;;  %s255_s15 = smov [#allocation2]   ;;  %s256_s17 = smov [#allocation5]  }
   0x3   :  { %s18_s16 = sshll.u32 %s255_s15, 4  ;;  %s27_s18 = sshll.u32 %s256_s17, 4  ;;  %s19_s16 = int_to_ptr.vmem [resolvable:$true] %s18_s16  ;;  %s28_s18 = int_to_ptr.vmem [resolvable:$true] %s27_s18 }
   0x4   :  { %s197_s19 = scalar_lea.vmem %s19_s16, 128  ;;  %p202_p1 = scmp.lt.s32.totalorder %s19_s16, %s19_s16 }
   0x5   :  { %p198_p0 = scmp.ne.s32.totalorder %s19_s16, %s197_s19  ;;  %p203_p2 = scmp.lt.s32.totalorder %s197_s19, %s197_s19 }
   0x7   :  { %p204_p3 = por %p203_p2, %p202_p1 }
   0x9   :  { %p205_p4 = pnand %p204_p3, %p198_p0 }
   0xb   :  { %208 = shalt.err (!%p205_p4)
}
   0xc   :  { %21 = dma.hbm_to_vmem [thread:$0]  %s302_s0, 128, %s19_s16, [#allocation3]  }
   0xd   :  { %s217_s22 = scalar_lea.vmem %s28_s18, 256  ;;  %p222_p6 = scmp.lt.s32.totalorder %s28_s18, %s28_s18 }
   0xe   :  { %p218_p5 = scmp.ne.s32.totalorder %s28_s18, %s217_s22  ;;  %p223_p7 = scmp.lt.s32.totalorder %s217_s22, %s217_s22 }
  0x10   :  { %p224_p8 = por %p223_p7, %p222_p6 }
  0x12   :  { %p225_p9 = pnand %p224_p8, %p218_p5 }
  0x14   :  { %228 = shalt.err (!%p225_p9)
}
  0x15   :  { %s257_s23 = smov 128   ;;  %s258_s24 = smov 8  }
  0x16   :  { %33 = dma.hbm_to_vmem [thread:$0]  %s303_s1, 256, %s28_s18, [#allocation6], %s257_s23, %s257_s23, %s258_s24  }
  0x17   :  { %249 = dma.done.wait [#allocation3], 128  }
  0x18   :  { %250 = vsyncadd [#allocation3], 4294967168 }
  0x19   :  { %251 = dma.done.wait [#allocation6], 256  }
  0x1a   :  { %252 = vsyncadd [#allocation6], 4294967040  ;;  %v259_v0 = vmov 0.0   ;;  %vm260_vm0 = vmmov 0   ;;  %v46_v1 = vld [vmem:[#allocation5 + $0x8] sm:$0xff]  ;;  %v45_v2 = vld [vmem:[#allocation5] sm:$0xff]  ;;  %v121_v4 = vlaneseq }
  0x1b   :  { %175 = vmatprep.subr.mxu0 %v259_v0  ;;  %179 = vmatprep.mubr.msk.f32.mxu0 %vm260_vm0, %v259_v0  ;;  %v44_v3 = vld [vmem:[#allocation2] sm:$0xff]  ;;  %vm47_vm1 = vcmask 130048   ;;  %s261_s29 = smov [#allocation7]   ;;  %vm151_vm3 = vcmask 48128  }
  0x1c   :  { %176 = vmatpush3.msra.mxu0 %v46_v1  ;;  %v122_v5 = vand.u32 127, %v121_v4  ;;  %v128_v6 = vmul.f32 %v44_v3, %v44_v3  ;;  %v170_v7 = vld [vmem:[%s304_s2] ss:$0 sm:$0xff]  ;;  %s159_s30 = sshll.u32 %s261_s29, 4  ;;  %s160_s30 = int_to_ptr.vmem [resolvable:$true] %s159_s30 }
  0x1d   :  { %177 = vmatprep.subr.mxu0 %v259_v0  ;;  %v171_v15 = vld [vmem:[%s305_s3] ss:$0 sm:$0xff]  ;;  %s229_s2 = scalar_lea.vmem %s160_s30, 128  ;;  %p234_p11 = scmp.lt.s32.totalorder %s160_s30, %s160_s30 }
  0x1e   :  { %178 = vmatpush3.msra.mxu0 %v45_v2  ;;  %vm123_vm2 = vcmp.ge.s32.totalorder %v122_v5, 6  ;;  %v136_v10 = vmul.f32 %v170_v7, %v128_v6  ;;  %p230_p10 = scmp.ne.s32.totalorder %s160_s30, %s229_s2  ;;  %p235_p12 = scmp.lt.s32.totalorder %s229_s2, %s229_s2 }
  0x1f   :  { %180 = vmatmul.mubr.msk.f32.vlgmr.msra.gmra.mxu0 %vm47_vm1, %v44_v3 }
  0x20   :  { %v137_v13 = vsel %vm47_vm1, %v136_v10, 0.0  ;;  %p236_p13 = por %p235_p12, %p234_p11 }
  0x22   :  { %p237_p0 = pnand %p236_p13, %p230_p10 }
  0xdf   :  { %v117_v8 = vpop.f32.mrf.mxu0 }
  0xe0   :  { %v124_v9 = vmul.f32 %v117_v8, %v117_v8  ;;  %v147_v18 = vadd.f32 %v171_v15, %v117_v8 }
  0xe1   :  { %v181_v11 = vpop.f32.mrf.mxu0 }
  0xe2   :  { %v125_v12 = vsel %vm123_vm2, %v124_v9, 0.0 }
  0xe3   :  { %126 = vadd.xlane.f32.xlu0 %v125_v12 }
  0xe7   :  { %138 = vadd.xlane.f32.xlu0 %v137_v13 }
 0x16c   :  { %v127_v14 = vpop.xlane.xlu0 %126 }
 0x170   :  { %v139_v16 = vpop.xlane.xlu0 %138 }
 0x171   :  { %v148_v17 = vsub.f32 %v127_v14, %v139_v16 }
 0x173   :  { %v149_v19 = vmul.f32 0.5, %v148_v17 }
 0x175   :  { %v150_v20 = vadd.f32 %v149_v19, %v147_v18 }
 0x177   :  { %152 = vst.msk [vmem:[#allocation7] sm:$0xff] %vm151_vm3, %v150_v20 }
 0x178   :  { %240 = shalt.err (!%p237_p0)
}
 0x179   :  { %162 = dma.vmem_to_hbm [thread:$0]  %s160_s30, 128, %s306_s4, [#allocation4]  }
 0x17a   :  { %253 = dma.done.wait [#allocation4], 128  }
 0x17b   :  { %254 = vsyncadd [#allocation4], 4294967168 }
 0x17c   :  { %166 = vsyncpa [#allocation3], 1 }
 0x17d   :  { %167 = vsyncpa [#allocation6], 1 }
 0x17e   :  { %168 = vsyncpa [#allocation4], 1 }

</bundles_post_ra>
